<compile_context>
chip_gen: v5e
topology: v5e:2x2
jax: 0.10.0
libtpu: 0.0.40
codegen_flags: <defaults>
</compile_context>

<pallas_src>
import functools

import jax
import jax.numpy as jnp
from jax.experimental import pallas as pl
from jax.experimental.pallas import tpu as pltpu


def _ce_kernel(logits_ref, labels_ref, loss_ref, acc_ref, *, n_rows, block_rows):
    """One grid step: partial cross-entropy sum over a (block_rows, C) tile.

    logits_ref: (block_rows, C) native dtype, VMEM
    labels_ref: (block_rows, 1) int32, VMEM
    loss_ref:   (1, 1) float32, SMEM output (written on the last step only)
    acc_ref:    (1, 1) float32, VMEM scratch accumulator
    """
    pid = pl.program_id(0)

    @pl.when(pid == 0)
    def _():
        acc_ref[...] = jnp.zeros_like(acc_ref)

    # Cast to f32 inside the kernel (bf16 travels over HBM at half the bytes).
    logits = logits_ref[...].astype(jnp.float32)          # (block_rows, C)
    labels = labels_ref[...]                              # (block_rows, 1)
    bn, c = logits.shape

    # Numerically-stable log-sum-exp along the class (lane) axis.
    # NOTE: with C=10 only 10/128 lanes do useful work; acceptable for STL10.
    row_max = jnp.max(logits, axis=-1, keepdims=True)      # (bn, 1)
    shifted = logits - row_max
    sum_exp = jnp.sum(jnp.exp(shifted), axis=-1, keepdims=True)
    lse = row_max + jnp.log(sum_exp)                       # (bn, 1)

    # Gather the label logit via a one-hot compare (no dynamic gather on TPU).
    class_ids = jax.lax.broadcasted_iota(jnp.int32, (bn, c), 1)
    onehot = (class_ids == labels).astype(jnp.float32)     # (bn, C)
    picked = jnp.sum(logits * onehot, axis=-1, keepdims=True)

    per_row = lse - picked                                 # (bn, 1)

    # Mask rows past N when the last block is partial (garbage padding rows).
    if n_rows % block_rows != 0:
        row_ids = pid * block_rows + jax.lax.broadcasted_iota(
            jnp.int32, (bn, 1), 0)
        per_row = jnp.where(row_ids < n_rows, per_row, 0.0)

    acc_ref[...] += jnp.sum(per_row, keepdims=True)        # (1, 1) partial sum

    @pl.when(pid == pl.num_programs(0) - 1)
    def _():
        # Mean reduction; 1/N is a trace-time constant (multiply, not divide).
        loss_ref[0, 0] = jnp.sum(acc_ref[...]) * jnp.float32(1.0 / n_rows)


def stl10_loss(out, label, *, block_rows=None):
    """Cross-entropy loss, mean reduction, matching nn.CrossEntropyLoss().

    out:   (N, C) float logits (any float dtype; kept in native dtype for DMA)
    label: (N,)   int class indices in [0, C)
    """
    n, c = out.shape
    labels = label.astype(jnp.int32).reshape(n, 1)

    if block_rows is None:
        # Size the batch tile for ~4 MiB per input buffer (double-buffered ->
        # ~8 MiB), comfortably inside v7x's 32 MiB scoped-VMEM default while
        # large enough to amortize the ~0.35 us/step grid overhead.
        itemsize = jnp.dtype(out.dtype).itemsize
        lanes = max(c, 128)                       # lane padding to 128
        cap = max(8, ((4 * 1024 * 1024) // (lanes * itemsize)) // 8 * 8)
        block_rows = n if n <= cap else cap       # ==n (full dim) or mult of 8

    grid = (pl.cdiv(n, block_rows),)
    kernel = functools.partial(_ce_kernel, n_rows=n, block_rows=block_rows)

    loss = pl.pallas_call(
        kernel,
        out_shape=jax.ShapeDtypeStruct((1, 1), jnp.float32),
        grid=grid,
        in_specs=[
            pl.BlockSpec((block_rows, c), lambda i: (i, 0)),
            pl.BlockSpec((block_rows, 1), lambda i: (i, 0)),
        ],
        out_specs=pl.BlockSpec(memory_space=pltpu.MemorySpace.SMEM),
        scratch_shapes=[pltpu.VMEM((1, 1), jnp.float32)],
        compiler_params=pltpu.CompilerParams(
            dimension_semantics=("arbitrary",)),
    )(out, labels)
    return loss[0, 0]


if __name__ == "__main__":
    key = jax.random.PRNGKey(0)
    k1, k2, k3, k4 = jax.random.split(key, 4)

    # Case 1: STL10-like tiny batch (single block, block == full batch).
    N, C = 8, 10
    logits = jax.random.normal(k1, (N, C), dtype=jnp.float32)
    labels = jax.random.randint(k2, (N,), 0, C, dtype=jnp.int32)

    loss = stl10_loss(logits, labels)
    jax.block_until_ready(loss)

    logp = jax.nn.log_softmax(logits, axis=-1)
    ref = -jnp.mean(logp[jnp.arange(N), labels])
    assert jnp.allclose(loss, ref, atol=1e-5), (loss, ref)

    # Case 2: exercise the tiled accumulator path with a partial last block.
    N2, C2, BR = 200, 10, 64
    logits2 = jax.random.normal(k3, (N2, C2), dtype=jnp.float32)
    labels2 = jax.random.randint(k4, (N2,), 0, C2, dtype=jnp.int32)

    loss2 = stl10_loss(logits2, labels2, block_rows=BR)
    jax.block_until_ready(loss2)

    logp2 = jax.nn.log_softmax(logits2, axis=-1)
    ref2 = -jnp.mean(logp2[jnp.arange(N2), labels2])
    assert jnp.allclose(loss2, ref2, atol=1e-5, rtol=1e-5), (loss2, ref2)

    print("KERNEL_OK")
</pallas_src>

<mosaic_0001>
module attributes {stable_mosaic.version = 11 : i64} {
  func.func @_ce_kernel(%arg0: i32, %arg1: memref<8x10xf32, #tpu.memory_space<vmem>>, %arg2: memref<8x1xi32, #tpu.memory_space<vmem>>, %arg3: memref<1x1xf32, #tpu.memory_space<smem>>, %arg4: memref<1x1xf32, #tpu.memory_space<vmem>>) attributes {dimension_semantics = [#tpu.dimension_semantics<arbitrary>], iteration_bounds = array<i64: 1>, scalar_prefetch = 0 : i64, scratch_operands = 1 : i64, tpu.core_type = #tpu.core_type<tc>, window_params = [{transform_indices = @transform_0, window_bounds = array<i64: 8, 10>}, {transform_indices = @transform_1, window_bounds = array<i64: 8, 1>}, {transform_indices = @transform_2, window_bounds = array<i64: 1, 1>}]} {
    %c0_i32 = arith.constant 0 : i32
    %0 = arith.cmpi eq, %arg0, %c0_i32 : i32
    %1 = arith.extui %0 : i1 to i32
    %c0_i32_0 = arith.constant 0 : i32
    %2 = arith.cmpi ne, %1, %c0_i32_0 : i32
    scf.if %2 {
      %cst_13 = arith.constant 0.000000e+00 : f32
      %34 = vector.broadcast %cst_13 : f32 to vector<1x1xf32>
      %c0_14 = arith.constant 0 : index
      %c0_15 = arith.constant 0 : index
      %35 = vector.load %arg4[%c0_14, %c0_15] : memref<1x1xf32, #tpu.memory_space<vmem>>, vector<1x1xf32>
      tpu.vector_store %arg4[%c0_14, %c0_15], %34 {strides = array<i32>} : memref<1x1xf32, #tpu.memory_space<vmem>>, vector<1x1xf32>,
    } else {
    }
    %c0 = arith.constant 0 : index
    %c0_1 = arith.constant 0 : index
    %3 = vector.load %arg1[%c0, %c0_1] : memref<8x10xf32, #tpu.memory_space<vmem>>, vector<8x10xf32>
    %c0_2 = arith.constant 0 : index
    %c0_3 = arith.constant 0 : index
    %4 = vector.load %arg2[%c0_2, %c0_3] : memref<8x1xi32, #tpu.memory_space<vmem>>, vector<8x1xi32>
    %cst = arith.constant dense<0xFF800000> : vector<8xf32>
    %5 = vector.multi_reduction <maximumf>, %3, %cst [1] : vector<8x10xf32> to vector<8xf32>
    %6 = vector.shape_cast %5 : vector<8xf32> to vector<8x1xf32>
    %7 = vector.broadcast %6 : vector<8x1xf32> to vector<8x10xf32>
    %8 = arith.subf %3, %7 : vector<8x10xf32>
    %9 = math.exp %8 : vector<8x10xf32>
    %cst_4 = arith.constant dense<0.000000e+00> : vector<8xf32>
    %10 = vector.multi_reduction <add>, %9, %cst_4 [1] : vector<8x10xf32> to vector<8xf32>
    %11 = vector.shape_cast %10 : vector<8xf32> to vector<8x1xf32>
    %12 = math.log %11 : vector<8x1xf32>
    %13 = arith.addf %6, %12 : vector<8x1xf32>
    %14 = tpu.iota {dimensions = array<i32: 1>} : vector<8x10xi32>
    %15 = vector.broadcast %4 : vector<8x1xi32> to vector<8x10xi32>
    %16 = arith.cmpi eq, %14, %15 : vector<8x10xi32>
    %17 = arith.extui %16 : vector<8x10xi1> to vector<8x10xi32>
    %18 = arith.sitofp %17 : vector<8x10xi32> to vector<8x10xf32>
    %19 = arith.mulf %3, %18 : vector<8x10xf32>
    %cst_5 = arith.constant dense<0.000000e+00> : vector<8xf32>
    %20 = vector.multi_reduction <add>, %19, %cst_5 [1] : vector<8x10xf32> to vector<8xf32>
    %21 = vector.shape_cast %20 : vector<8xf32> to vector<8x1xf32>
    %22 = arith.subf %13, %21 : vector<8x1xf32>
    %c0_6 = arith.constant 0 : index
    %c0_7 = arith.constant 0 : index
    %23 = vector.load %arg4[%c0_6, %c0_7] : memref<1x1xf32, #tpu.memory_space<vmem>>, vector<1x1xf32>
    %24 = vector.shape_cast %22 : vector<8x1xf32> to vector<1x8x1xf32>
    %cst_8 = arith.constant dense<0.000000e+00> : vector<1xf32>
    %25 = vector.multi_reduction <add>, %24, %cst_8 [1, 2] : vector<1x8x1xf32> to vector<1xf32>
    %26 = vector.shape_cast %25 : vector<1xf32> to vector<1x1x1xf32>
    %27 = vector.extract %26[0, 0, 0] : f32 from vector<1x1x1xf32>
    %28 = vector.broadcast %27 : f32 to vector<1x1xf32>
    %29 = arith.addf %23, %28 : vector<1x1xf32>
    %c0_9 = arith.constant 0 : index
    %c0_10 = arith.constant 0 : index
    %30 = vector.load %arg4[%c0_9, %c0_10] : memref<1x1xf32, #tpu.memory_space<vmem>>, vector<1x1xf32>
    tpu.vector_store %arg4[%c0_9, %c0_10], %29 {strides = array<i32>} : memref<1x1xf32, #tpu.memory_space<vmem>>, vector<1x1xf32>,
    %c0_i32_11 = arith.constant 0 : i32
    %31 = arith.cmpi eq, %arg0, %c0_i32_11 : i32
    %32 = arith.extui %31 : i1 to i32
    %c0_i32_12 = arith.constant 0 : i32
    %33 = arith.cmpi ne, %32, %c0_i32_12 : i32
    scf.if %33 {
      %c0_13 = arith.constant 0 : index
      %c0_14 = arith.constant 0 : index
      %34 = vector.load %arg4[%c0_13, %c0_14] : memref<1x1xf32, #tpu.memory_space<vmem>>, vector<1x1xf32>
      %35 = vector.shape_cast %34 : vector<1x1xf32> to vector<1x1x1xf32>
      %cst_15 = arith.constant dense<0.000000e+00> : vector<1xf32>
      %36 = vector.multi_reduction <add>, %35, %cst_15 [1, 2] : vector<1x1x1xf32> to vector<1xf32>
      %37 = vector.shape_cast %36 : vector<1xf32> to vector<1x1x1xf32>
      %38 = vector.extract %37[0, 0, 0] : f32 from vector<1x1x1xf32>
      %cst_16 = arith.constant 1.250000e-01 : f32
      %39 = arith.mulf %38, %cst_16 : f32
      %c0_17 = arith.constant 0 : index
      %c0_18 = arith.constant 0 : index
      %40 = memref.load %arg3[%c0_17, %c0_18] : memref<1x1xf32, #tpu.memory_space<smem>>
      memref.store %39, %arg3[%c0_17, %c0_18] : memref<1x1xf32, #tpu.memory_space<smem>>
    } else {
    }
    return
  }
  func.func @transform_0(%arg0: i32) -> (i32, i32) {
    %c0_i32 = arith.constant 0 : i32
    %c0_i32_0 = arith.constant 0 : i32
    return %arg0, %c0_i32 : i32, i32
  }
  func.func @transform_1(%arg0: i32) -> (i32, i32) {
    %c0_i32 = arith.constant 0 : i32
    %c0_i32_0 = arith.constant 0 : i32
    return %arg0, %c0_i32 : i32, i32
  }
  func.func @transform_2(%arg0: i32) -> (i32, i32) {
    %c0_i32 = arith.constant 0 : i32
    %c0_i32_0 = arith.constant 0 : i32
    %c0_i32_1 = arith.constant 0 : i32
    return %c0_i32, %c0_i32_0 : i32, i32
  }
}

</mosaic_0001>

<bundles_post_ra>
// kernel: tpu_custom_call.1
= control target key start
LH: loop header
LB: loop body
LE: loop exit
PB: predicated region body
PF: predicated region fallthrough
CT: control target
= control target key end

     0   :  { %vm20_vm0 = vcmask 80896   ;;  %s145_s0 = inlined_call_operand.vmem [shape: f32[8,10], index: 0, kind: input, shape index: {}]   ;;  %s146_s1 = inlined_call_operand.vmem [shape: s32[8,1], index: 1, kind: input, shape index: {}]   ;;  %s147_s2 = inlined_call_operand.hbm [shape: f32[1,1], index: 2, kind: output, shape index: {}]  }
   0x1   :  { %v18_v0 = vld [vmem:[%s145_s0] sm:$0xff] }
   0x2   :  { %7 = vsyncpa [#allocation4], 0  ;;  %v21_v1 = vsel %vm20_vm0, %v18_v0, -inf  ;;  %v113_v2 = vmov 0   ;;  %v19_v3 = vld [vmem:[%s146_s1] sm:$0xff]  ;;  %vm16_vm1 = vcmask 0   ;;  %v33_v10 = vlaneseq }
   0x3   :  { %94 = vset.pattern.permute.xlu0 %v113_v2  ;;  %v114_v4 = vmov 0.0   ;;  %vm47_vm3 = vcmask 7168   ;;  %s76_s14 = sshll.u32 %s147_s2, 4  ;;  %s115_s17 = smov [#allocation3]   ;;  %s77_s14 = int_to_ptr.hbm [resolvable:$true] %s76_s14 }
   0x4   :  { %22 = vmax.xlane.f32.xlu0 %v21_v1  ;;  %17 = vst.msk [vmem:[#allocation2] sm:$0x1] %vm16_vm1, %v114_v4  ;;  %v34_v11 = vand.u32 127, %v33_v10 }
   0xb   :  { %v46_v30 = vld [vmem:[#allocation2] sm:$0x1] }
  0x18   :  { %36 = vperm.xlu0 %94, %v19_v3  }
  0x77   :  { %v23_v5 = vpop.xlane.xlu0 %22 }
  0x78   :  { %v24_v6 = vsub.f32 %v18_v0, %v23_v5 }
  0x7a   :  { %v25_v7 = vmul.f32 1.442695, %v24_v6 }
  0x7c   :  { %95 = vpow2.f32 %v25_v7 }
  0x82   :  { %v96_v8 = vpop.eup %95 }
  0x83   :  { %v27_v9 = vsel %vm20_vm0, %v96_v8, 0.0 }
  0x84   :  { %28 = vadd.xlane.f32.xlu1 %v27_v9 }
  0x8a   :  { %v37_v12 = vpop.permute.xlu0 %36 }
  0x8b   :  { %vm38_vm2 = vcmp.eq.s32.totalorder %v34_v11, %v37_v12 }
  0x8c   :  { %v86_v13 = vsel %vm38_vm2, 1.0, %v114_v4 }
  0x8d   :  { %v41_v14 = vmul.f32 %v86_v13, %v18_v0 }
  0x8f   :  { %v42_v15 = vsel %vm20_vm0, %v41_v14, 0.0 }
  0x90   :  { %43 = vadd.xlane.f32.xlu1 %v42_v15 }
  0xf7   :  { %v29_v16 = vpop.xlane.xlu1 %28 }
  0xf8   :  { %97 = vlog2.f32 %v29_v16 }
  0xfe   :  { %v98_v17 = vpop.eup %97 }
  0xff   :  { %v31_v18 = vmul.f32 0.6931472, %v98_v17 }
 0x101   :  { %v32_v19 = vadd.f32 %v31_v18, %v23_v5 }
 0x103   :  { %v44_v20 = vpop.xlane.xlu1 %43 }
 0x104   :  { %v45_v21 = vsub.f32 %v32_v19, %v44_v20 }
 0x106   :  { %v48_v22 = vsel %vm47_vm3, %v45_v21, 0.0 }
 0x107   :  { %49 = vadd.xlane.f32.xlu2 %v48_v22 }
 0x17a   :  { %v50_v23 = vpop.xlane.xlu2 %49 }
 0x17b   :  { %v51_v24 = vrot.slane %v50_v23, 4 }
 0x17d   :  { %v52_v25 = vadd.f32 %v51_v24, %v50_v23 }
 0x17f   :  { %v53_v26 = vrot.slane %v52_v25, 2 }
 0x181   :  { %v54_v27 = vadd.f32 %v53_v26, %v52_v25 }
 0x183   :  { %v55_v28 = vrot.slane %v54_v27, 1 }
 0x185   :  { %v56_v29 = vadd.f32 %v55_v28, %v54_v27 }
 0x187   :  { %87 = vpush %v56_v29 }
 0x1b8   :  { %s88_s0 = spop %87 }
 0x1b9   :  { %v58_v31 = vstv %s88_s0 }
 0x1ba   :  { %v59_v32 = vadd.f32 %v58_v31, %v46_v30 }
 0x1bc   :  { %61 = vst.msk [vmem:[#allocation2] sm:$0x1] %vm16_vm1, %v59_v32 }
 0x1c3   :  { %v65_v33 = vld [vmem:[#allocation2] sm:$0x1] }
 0x1c4   :  { %89 = vpush %v65_v33 }
 0x1f5   :  { %s90_s15 = spop %89 }
 0x1f6   :  { %s68_s16 = smul.f32 0.125, %s90_s15 }
 0x1f8   :  { %70 = sst [smem:[#allocation3]] %s68_s16 }
 0x1f9   :  { %79 = dma.smem_to_hbm %s115_s17, 16, %s77_s14, [#allocation4]  }
 0x1fa   :  { %111 = dma.done.wait [#allocation4], 16  }
 0x1fb   :  { %112 = vsyncadd [#allocation4], 4294967280 }
 0x1fc   :  { %84 = sfence }
 0x1fd   :  { %85 = vsyncpa [#allocation4], 1 }

</bundles_post_ra>
